<compile_context>
chip_gen: v7x
topology: tpu7x:2x2x1
jax: 0.10.0
libtpu: 0.0.40
codegen_flags: <defaults>
</compile_context>

<pallas_src>
import jax
import jax.numpy as jnp
from jax.experimental import pallas as pl
from jax.experimental.pallas import tpu as pltpu


_FUSED_MAX_HW = 1024                    # fused (H*W, H*W) operators: <= 2 MiB each in bf16
_VMEM_BLOCK_BUDGET = 8 * 1024 * 1024    # budget for the x/y blocks (2 inputs x 2 buffers)


# ---------------------------------------------------------------------------
# DFT operator construction (plain XLA, done once per shape).
# ---------------------------------------------------------------------------
def _dft_cos_sin(n):
    """cos/sin DFT matrices: F[j, k] = exp(-2i*pi*j*k/n) = cos(a) - i*sin(a)."""
    j = jnp.arange(n, dtype=jnp.int32)
    # (j*k) mod n keeps the angle in [0, 2*pi): exact f32 arguments even for
    # large n (no argument-reduction loss).  int32 products are exact for n <= 46340.
    jk = (j[:, None] * j[None, :]) % n
    ang = (2.0 * jnp.pi / n) * jk.astype(jnp.float32)
    return jnp.cos(ang), jnp.sin(ang)


def _fused_dft_operators(h, w):
    """Dense (H*W, H*W) real/imag operators of the full 2-D DFT.

    With row-major flattening d_flat[j*W + k] = d[j, k]:
        FFT2(d).flatten() = d_flat @ K ,  K[(j,k), (p,q)] = F_H[p, j] * F_W[q, k]
    """
    a, b = _dft_cos_sin(h)   # row-axis DFT (cos, sin)
    c, d = _dft_cos_sin(w)   # col-axis DFT (cos, sin)
    hw = h * w
    k_re = (jnp.einsum("pj,kq->jkpq", a, c)
            - jnp.einsum("pj,kq->jkpq", b, d)).reshape(hw, hw)
    # This is -Im of the operator; the sign is irrelevant under |.|.
    k_im = (jnp.einsum("pj,kq->jkpq", a, d)
            + jnp.einsum("pj,kq->jkpq", b, c)).reshape(hw, hw)
    return k_re.astype(jnp.bfloat16), k_im.astype(jnp.bfloat16)


def _separable_dft_operators(h, w):
    a, b = _dft_cos_sin(h)
    c, d = _dft_cos_sin(w)
    ab = jnp.concatenate([a, b], axis=1).astype(jnp.bfloat16)   # (H, 2H) = [A | B]
    cd = jnp.concatenate([c, d], axis=1).astype(jnp.bfloat16)   # (W, 2W) = [C | D]
    return cd, ab


# ---------------------------------------------------------------------------
# Kernels.
# ---------------------------------------------------------------------------
def _fft_l1_fused_kernel(x_ref, y_ref, kre_ref, kim_ref, out_ref):
    """x/y blocks: (TB, H*W) f32.  kre/kim: (H*W, H*W) bf16 fused DFT operators."""
    # f32 difference (avoids cancellation), bf16 operands for single-pass MXU matmuls.
    d = (x_ref[...] - y_ref[...]).astype(jnp.bfloat16)
    re = jnp.dot(d, kre_ref[...], preferred_element_type=jnp.float32)   # (TB, HW)
    im = jnp.dot(d, kim_ref[...], preferred_element_type=jnp.float32)   # (TB, HW)
    # Per-block, lane-dense partial only; global reduce + divide happen outside.
    partial = jnp.sum(jnp.abs(re) + jnp.abs(im), axis=0)                # (HW,)
    out_ref[...] = partial.reshape(1, 1, -1)


def _fft_l1_separable_kernel(x_ref, y_ref, cd_ref, ab_ref, out_ref):
    """x/y blocks: (TB, H, W) f32.  cd: (W, 2W) = [C|D].  ab: (H, 2H) = [A|B]."""
    tb, h, w = x_ref.shape
    d = (x_ref[...] - y_ref[...]).astype(jnp.bfloat16)

    # Stage 1 -- column DFT of all TB images in one MXU matmul:
    #   (TB*H, W) @ (W, 2W) -> [dC | dD] stacked over images.
    r = jnp.dot(d.reshape(tb * h, w), cd_ref[...],
                preferred_element_type=jnp.float32)

    # Flip the contraction axis with a minor-dims (XLU) transpose, then
    # Stage 2 -- row DFT of all TB images in one MXU matmul: (TB*2W, H) @ (H, 2H).
    r_t = jnp.swapaxes(r.reshape(tb, h, 2 * w), 1, 2)            # (TB, 2W, H)
    s = jnp.dot(r_t.reshape(tb * 2 * w, h).astype(jnp.bfloat16), ab_ref[...],
                preferred_element_type=jnp.float32)
    s = s.reshape(tb, 2 * w, 2 * h)

    # s[:, :W, :H] = (A d C)^T   s[:, :W, H:] = (B d C)^T
    # s[:, W:, :H] = (A d D)^T   s[:, W:, H:] = (B d D)^T
    re_t = s[:, :w, :h] - s[:, w:, h:]            # Re(FFT2(d))^T
    im_t = s[:, w:, :h] + s[:, :w, h:]            # -Im(FFT2(d))^T (sign dies under |.|)
    # Sum over the image axis only (VPU adds); keep the (W, H) tile as the partial.
    out_ref[...] = jnp.sum(jnp.abs(re_t) + jnp.abs(im_t), axis=0, keepdims=True)


# ---------------------------------------------------------------------------
# Wrappers.
# ---------------------------------------------------------------------------
def _choose_batch_tile(bc, cap):
    """Images per grid step.  Sublane-aligned whenever the batch is tiled."""
    tb = max(1, min(bc, cap))
    if tb < bc:
        tb = max(8, (tb // 8) * 8)   # keep the (8, 128) rule when nblk > 1
    return tb


def _pad_batch(arr, bc, tb):
    bc_pad = pl.cdiv(bc, tb) * tb
    if bc_pad != bc:
        pad = jnp.zeros((bc_pad - bc,) + arr.shape[1:], arr.dtype)
        arr = jnp.concatenate([arr, pad], axis=0)   # zero images contribute 0 to the sum
    return arr, bc_pad


def _compiler_params(est_vmem_bytes):
    kwargs = dict(dimension_semantics=("parallel",))   # no carried state -> dual-TC on v7x
    if est_vmem_bytes > 12 * 1024 * 1024:
        # Raise the scoped-VMEM cap only for big tiles (v5e default is 16 MiB);
        # stay below v7x's 64 MiB physical VMEM.
        kwargs["vmem_limit_bytes"] = int(min(48 * 1024 * 1024, 2 * est_vmem_bytes))
    return pltpu.CompilerParams(**kwargs)


def _fft_l1_fused(xs, ys, h, w):
    bc = xs.shape[0]
    hw = h * w
    # Images per grid step: fill MXU rows / sublanes, bounded by the VMEM budget.
    vmem_cap = max(1, _VMEM_BLOCK_BUDGET // (4 * hw * 4))
    tb = _choose_batch_tile(bc, min(128, vmem_cap))
    xs2, bc_pad = _pad_batch(xs.reshape(bc, hw), bc, tb)   # lane-dense (bc, H*W)
    ys2, _ = _pad_batch(ys.reshape(bc, hw), bc, tb)
    nblk = bc_pad // tb

    k_re, k_im = _fused_dft_operators(h, w)

    est = 4 * tb * hw * 4 + 4 * hw * hw * 2 + 4 * tb * hw * 4
    return pl.pallas_call(
        _fft_l1_fused_kernel,
        out_shape=jax.ShapeDtypeStruct((nblk, 1, hw), jnp.float32),
        grid_spec=pltpu.PrefetchScalarGridSpec(
            num_scalar_prefetch=0,
            grid=(nblk,),
            in_specs=[
                pl.BlockSpec((tb, hw), lambda i: (i, 0)),
                pl.BlockSpec((tb, hw), lambda i: (i, 0)),
                # Constant DFT operators (same block every step; bf16 to halve VMEM).
                pl.BlockSpec((hw, hw), lambda i: (0, 0)),
                pl.BlockSpec((hw, hw), lambda i: (0, 0)),
            ],
            out_specs=pl.BlockSpec((1, 1, hw), lambda i: (i, 0, 0)),
        ),
        compiler_params=_compiler_params(est),
    )(xs2, ys2, k_re, k_im)


def _fft_l1_separable(xs, ys, h, w):
    bc = xs.shape[0]
    # Enough images per step for >= 256 rows into the stage-1 matmul, VMEM-capped.
    vmem_cap = max(1, _VMEM_BLOCK_BUDGET // (4 * h * w * 4))
    tb = _choose_batch_tile(bc, min(int(pl.cdiv(256, h)), vmem_cap))
    xs2, bc_pad = _pad_batch(xs, bc, tb)
    ys2, _ = _pad_batch(ys, bc, tb)
    nblk = bc_pad // tb

    cd, ab = _separable_dft_operators(h, w)

    est = (4 * tb * h * w * 4                        # x/y blocks (f32, double-buffered)
           + 4 * (h * 2 * h + w * 2 * w) * 2         # [A|B], [C|D] (bf16, double-buffered)
           + 2 * tb * h * 2 * w * 4                  # stage-1 intermediate + transpose
           + 2 * tb * 2 * w * 2 * h * 4)             # stage-2 output + abs temporaries
    # TODO(synk): for very large H/W (>~512) the frequency axes should also be
    # tiled; typical image-loss sizes fit comfortably in VMEM as-is.
    return pl.pallas_call(
        _fft_l1_separable_kernel,
        out_shape=jax.ShapeDtypeStruct((nblk, w, h), jnp.float32),
        grid_spec=pltpu.PrefetchScalarGridSpec(
            num_scalar_prefetch=0,
            grid=(nblk,),
            in_specs=[
                pl.BlockSpec((tb, h, w), lambda i: (i, 0, 0)),
                pl.BlockSpec((tb, h, w), lambda i: (i, 0, 0)),
                pl.BlockSpec((w, 2 * w), lambda i: (0, 0)),
                pl.BlockSpec((h, 2 * h), lambda i: (0, 0)),
            ],
            out_specs=pl.BlockSpec((1, w, h), lambda i: (i, 0, 0)),
        ),
        compiler_params=_compiler_params(est),
    )(xs2, ys2, cd, ab)


def fft_loss(x, y):
    """Equivalent of FFTLoss().forward(x, y) for NCHW real inputs."""
    n, c, h, w = x.shape
    bc = n * c
    denom = 2.0 * n * c * h * w

    xs = x.reshape(bc, h, w).astype(jnp.float32)
    ys = y.reshape(bc, h, w).astype(jnp.float32)

    if h * w <= _FUSED_MAX_HW:
        partials = _fft_l1_fused(xs, ys, h, w)
    else:
        partials = _fft_l1_separable(xs, ys, h, w)

    # Single cross-lane reduction + divide, outside the kernel (padding rows are 0).
    return jnp.sum(partials) / denom


def _reference_fft_loss(x, y):
    # Pure-JAX reference of the PyTorch semantics (full 2-D complex FFT,
    # L1 mean over real & imag parts).
    fx = jnp.fft.fft2(x.astype(jnp.float32), axes=(-2, -1))
    fy = jnp.fft.fft2(y.astype(jnp.float32), axes=(-2, -1))
    d = fx - fy
    return (jnp.sum(jnp.abs(d.real)) + jnp.sum(jnp.abs(d.imag))) / (2 * d.size)


if __name__ == "__main__":
    key = jax.random.PRNGKey(0)
    kx, ky = jax.random.split(key)
    shape = (2, 4, 16, 16)   # N, C, H, W
    x = jax.random.normal(kx, shape, dtype=jnp.float32)
    y = jax.random.normal(ky, shape, dtype=jnp.float32)

    loss = jax.jit(fft_loss)(x, y)
    jax.block_until_ready(loss)

    ref = _reference_fft_loss(x, y)
    assert jnp.allclose(loss, ref, rtol=5e-3, atol=1e-2), (loss, ref)

    print("KERNEL_OK")
</pallas_src>

<mosaic_0001>
module attributes {stable_mosaic.version = 11 : i64} {
  func.func @_fft_l1_fused_kernel(%arg0: i32, %arg1: memref<8x256xf32, #tpu.memory_space<vmem>>, %arg2: memref<8x256xf32, #tpu.memory_space<vmem>>, %arg3: memref<256x256xbf16, #tpu.memory_space<vmem>>, %arg4: memref<256x256xbf16, #tpu.memory_space<vmem>>, %arg5: memref<1x1x256xf32, #tpu.memory_space<vmem>>) attributes {dimension_semantics = [#tpu.dimension_semantics<parallel>], iteration_bounds = array<i64: 1>, scalar_prefetch = 0 : i64, scratch_operands = 0 : i64, tpu.core_type = #tpu.core_type<tc>, window_params = [{transform_indices = @transform_0, window_bounds = array<i64: 8, 256>}, {transform_indices = @transform_1, window_bounds = array<i64: 8, 256>}, {pipeline_mode = #tpu.pipeline_mode<synchronous>, transform_indices = @transform_2, window_bounds = array<i64: 256, 256>}, {pipeline_mode = #tpu.pipeline_mode<synchronous>, transform_indices = @transform_3, window_bounds = array<i64: 256, 256>}, {transform_indices = @transform_4, window_bounds = array<i64: 1, 1, 256>}]} {
    %c0 = arith.constant 0 : index
    %c0_0 = arith.constant 0 : index
    %0 = vector.load %arg1[%c0, %c0_0] : memref<8x256xf32, #tpu.memory_space<vmem>>, vector<8x256xf32>
    %c0_1 = arith.constant 0 : index
    %c0_2 = arith.constant 0 : index
    %1 = vector.load %arg2[%c0_1, %c0_2] : memref<8x256xf32, #tpu.memory_space<vmem>>, vector<8x256xf32>
    %2 = arith.subf %0, %1 : vector<8x256xf32>
    %3 = arith.truncf %2 : vector<8x256xf32> to vector<8x256xbf16>
    %c0_3 = arith.constant 0 : index
    %c0_4 = arith.constant 0 : index
    %4 = vector.load %arg3[%c0_3, %c0_4] : memref<256x256xbf16, #tpu.memory_space<vmem>>, vector<256x256xbf16>
    %cst = arith.constant dense<0.000000e+00> : vector<8x256xf32>
    %5 = tpu.matmul %3, %4, %cst {dimension_numbers = #tpu.dot_dimension_numbers<[1], [0], [0], [1], [0, 0, 1, 1], [], []>} : vector<8x256xbf16>, vector<256x256xbf16>, vector<8x256xf32> -> vector<8x256xf32>
    %c0_5 = arith.constant 0 : index
    %c0_6 = arith.constant 0 : index
    %6 = vector.load %arg4[%c0_5, %c0_6] : memref<256x256xbf16, #tpu.memory_space<vmem>>, vector<256x256xbf16>
    %cst_7 = arith.constant dense<0.000000e+00> : vector<8x256xf32>
    %7 = tpu.matmul %3, %6, %cst_7 {dimension_numbers = #tpu.dot_dimension_numbers<[1], [0], [0], [1], [0, 0, 1, 1], [], []>} : vector<8x256xbf16>, vector<256x256xbf16>, vector<8x256xf32> -> vector<8x256xf32>
    %8 = math.absf %5 : vector<8x256xf32>
    %9 = math.absf %7 : vector<8x256xf32>
    %10 = arith.addf %8, %9 : vector<8x256xf32>
    %cst_8 = arith.constant dense<0.000000e+00> : vector<256xf32>
    %11 = vector.multi_reduction <add>, %10, %cst_8 [0] : vector<8x256xf32> to vector<256xf32>
    %12 = vector.shape_cast %11 : vector<256xf32> to vector<1x1x256xf32>
    %c0_9 = arith.constant 0 : index
    %c0_10 = arith.constant 0 : index
    %c0_11 = arith.constant 0 : index
    %13 = vector.load %arg5[%c0_9, %c0_10, %c0_11] : memref<1x1x256xf32, #tpu.memory_space<vmem>>, vector<1x1x256xf32>
    tpu.vector_store %arg5[%c0_9, %c0_10, %c0_11], %12 {strides = array<i32>} : memref<1x1x256xf32, #tpu.memory_space<vmem>>, vector<1x1x256xf32>,
    return
  }
  func.func @transform_0(%arg0: i32) -> (i32, i32) {
    %c0_i32 = arith.constant 0 : i32
    %c0_i32_0 = arith.constant 0 : i32
    return %arg0, %c0_i32 : i32, i32
  }
  func.func @transform_1(%arg0: i32) -> (i32, i32) {
    %c0_i32 = arith.constant 0 : i32
    %c0_i32_0 = arith.constant 0 : i32
    return %arg0, %c0_i32 : i32, i32
  }
  func.func @transform_2(%arg0: i32) -> (i32, i32) {
    %c0_i32 = arith.constant 0 : i32
    %c0_i32_0 = arith.constant 0 : i32
    %c0_i32_1 = arith.constant 0 : i32
    return %c0_i32, %c0_i32_0 : i32, i32
  }
  func.func @transform_3(%arg0: i32) -> (i32, i32) {
    %c0_i32 = arith.constant 0 : i32
    %c0_i32_0 = arith.constant 0 : i32
    %c0_i32_1 = arith.constant 0 : i32
    return %c0_i32, %c0_i32_0 : i32, i32
  }
  func.func @transform_4(%arg0: i32) -> (i32, i32, i32) {
    %c0_i32 = arith.constant 0 : i32
    %c0_i32_0 = arith.constant 0 : i32
    %c0_i32_1 = arith.constant 0 : i32
    return %arg0, %c0_i32, %c0_i32_0 : i32, i32, i32
  }
}

</mosaic_0001>

<bundles_post_ra>
// kernel: fft_loss.1
= control target key start
LH: loop header
LB: loop body
LE: loop exit
PB: predicated region body
PF: predicated region fallthrough
CT: control target
= control target key end

     0   :  { %s930_s2 = inlined_call_operand.vmem [shape: bf16[256,256], index: 2, kind: input, shape index: {}]   ;;  %s931_s3 = inlined_call_operand.vmem [shape: bf16[256,256], index: 3, kind: input, shape index: {}]   ;;  %s932_s0 = inlined_call_operand.vmem [shape: f32[8,256], index: 0, kind: input, shape index: {}]   ;;  %s933_s1 = inlined_call_operand.vmem [shape: f32[8,256], index: 1, kind: input, shape index: {}]   ;;  %s934_s4 = inlined_call_operand.vmem [shape: f32[1,1,256], index: 4, kind: output, shape index: {}]  }
   0x1   :  { %v601_v0 = vld [vmem:[%s930_s2 + $0x4] ss:$8 sps:$4 sm:$0xff]   ;;  %v605_v2 = vld [vmem:[%s930_s2] ss:$8 sps:$4 sm:$0xff]   ;;  %v607_v4 = vld [vmem:[%s930_s2 + $0x14] ss:$8 sps:$4 sm:$0xff]  }
   0x2   :  { %v603_v1 = vld [vmem:[%s931_s3 + $0x4] ss:$8 sps:$4 sm:$0xff]   ;;  %217 = vmatprep.subr.bf16.mxu0 %v601_v0  ;;  %v606_v3 = vld [vmem:[%s931_s3] ss:$8 sps:$4 sm:$0xff]   ;;  %v609_v5 = vld [vmem:[%s931_s3 + $0x14] ss:$8 sps:$4 sm:$0xff]  }
   0x3   :  { %450 = vmatprep.subr.bf16.mxu1 %v603_v1  ;;  %218 = vmatpush1.bf16.msra.mxu0 %v605_v2  ;;  %v611_v6 = vld [vmem:[%s930_s2 + $0x10] ss:$8 sps:$4 sm:$0xff]   ;;  %v613_v8 = vld [vmem:[%s930_s2 + $0x24] ss:$8 sps:$4 sm:$0xff]   ;;  %v617_v10 = vld [vmem:[%s930_s2 + $0x20] ss:$8 sps:$4 sm:$0xff]  }
   0x4   :  { %451 = vmatpush1.bf16.msra.mxu1 %v606_v3  ;;  %219 = vmatprep.subr.bf16.mxu0 %v607_v4  ;;  %v612_v7 = vld [vmem:[%s931_s3 + $0x10] ss:$8 sps:$4 sm:$0xff]   ;;  %v615_v9 = vld [vmem:[%s931_s3 + $0x24] ss:$8 sps:$4 sm:$0xff]   ;;  %v618_v11 = vld [vmem:[%s931_s3 + $0x20] ss:$8 sps:$4 sm:$0xff]  }
   0x5   :  { %452 = vmatprep.subr.bf16.mxu1 %v609_v5  ;;  %v619_v12 = vld [vmem:[%s930_s2 + $0x34] ss:$8 sps:$4 sm:$0xff]   ;;  %v623_v14 = vld [vmem:[%s930_s2 + $0x30] ss:$8 sps:$4 sm:$0xff]   ;;  %v625_v16 = vld [vmem:[%s930_s2 + $0x44] ss:$8 sps:$4 sm:$0xff]  }
   0x6   :  { %v621_v13 = vld [vmem:[%s931_s3 + $0x34] ss:$8 sps:$4 sm:$0xff]   ;;  %v624_v15 = vld [vmem:[%s931_s3 + $0x30] ss:$8 sps:$4 sm:$0xff]   ;;  %v627_v17 = vld [vmem:[%s931_s3 + $0x44] ss:$8 sps:$4 sm:$0xff]  }
   0x7   :  { %220 = vmatpush1.bf16.msra.mxu0 %v611_v6  ;;  %v629_v18 = vld [vmem:[%s930_s2 + $0x40] ss:$8 sps:$4 sm:$0xff]   ;;  %v631_v20 = vld [vmem:[%s930_s2 + $0x54] ss:$8 sps:$4 sm:$0xff]   ;;  %v635_v22 = vld [vmem:[%s930_s2 + $0x50] ss:$8 sps:$4 sm:$0xff]  }
   0x8   :  { %453 = vmatpush1.bf16.msra.mxu1 %v612_v7  ;;  %221 = vmatprep.subr.bf16.mxu0 %v613_v8  ;;  %v630_v19 = vld [vmem:[%s931_s3 + $0x40] ss:$8 sps:$4 sm:$0xff]   ;;  %v633_v21 = vld [vmem:[%s931_s3 + $0x54] ss:$8 sps:$4 sm:$0xff]   ;;  %v636_v23 = vld [vmem:[%s931_s3 + $0x50] ss:$8 sps:$4 sm:$0xff]  }
   0x9   :  { %454 = vmatprep.subr.bf16.mxu1 %v615_v9  ;;  %v637_v24 = vld [vmem:[%s930_s2 + $0x64] ss:$8 sps:$4 sm:$0xff]   ;;  %v641_v26 = vld [vmem:[%s930_s2 + $0x60] ss:$8 sps:$4 sm:$0xff]   ;;  %v643_v28 = vld [vmem:[%s930_s2 + $0x74] ss:$8 sps:$4 sm:$0xff]  }
   0xa   :  { %v639_v25 = vld [vmem:[%s931_s3 + $0x64] ss:$8 sps:$4 sm:$0xff]   ;;  %v642_v27 = vld [vmem:[%s931_s3 + $0x60] ss:$8 sps:$4 sm:$0xff]   ;;  %v645_v29 = vld [vmem:[%s931_s3 + $0x74] ss:$8 sps:$4 sm:$0xff]  }
   0xb   :  { %222 = vmatpush1.bf16.msra.mxu0 %v617_v10  ;;  %v647_v30 = vld [vmem:[%s930_s2 + $0x70] ss:$8 sps:$4 sm:$0xff]   ;;  %v649_v32 = vld [vmem:[%s930_s2 + $0x84] ss:$8 sps:$4 sm:$0xff]   ;;  %v653_v34 = vld [vmem:[%s930_s2 + $0x80] ss:$8 sps:$4 sm:$0xff]  }
   0xc   :  { %455 = vmatpush1.bf16.msra.mxu1 %v618_v11  ;;  %223 = vmatprep.subr.bf16.mxu0 %v619_v12  ;;  %v648_v31 = vld [vmem:[%s931_s3 + $0x70] ss:$8 sps:$4 sm:$0xff]   ;;  %v651_v33 = vld [vmem:[%s931_s3 + $0x84] ss:$8 sps:$4 sm:$0xff]   ;;  %v654_v35 = vld [vmem:[%s931_s3 + $0x80] ss:$8 sps:$4 sm:$0xff]  }
   0xd   :  { %456 = vmatprep.subr.bf16.mxu1 %v621_v13  ;;  %v655_v36 = vld [vmem:[%s930_s2 + $0x94] ss:$8 sps:$4 sm:$0xff]   ;;  %v659_v38 = vld [vmem:[%s930_s2 + $0x90] ss:$8 sps:$4 sm:$0xff]   ;;  %v661_v40 = vld [vmem:[%s930_s2 + $0xa4] ss:$8 sps:$4 sm:$0xff]  }
   0xe   :  { %v657_v37 = vld [vmem:[%s931_s3 + $0x94] ss:$8 sps:$4 sm:$0xff]   ;;  %v660_v39 = vld [vmem:[%s931_s3 + $0x90] ss:$8 sps:$4 sm:$0xff]   ;;  %v663_v41 = vld [vmem:[%s931_s3 + $0xa4] ss:$8 sps:$4 sm:$0xff]  }
   0xf   :  { %224 = vmatpush1.bf16.msra.mxu0 %v623_v14  ;;  %v665_v42 = vld [vmem:[%s930_s2 + $0xa0] ss:$8 sps:$4 sm:$0xff]   ;;  %v667_v44 = vld [vmem:[%s930_s2 + $0xb4] ss:$8 sps:$4 sm:$0xff]   ;;  %v671_v48 = vld [vmem:[%s930_s2 + $0xb0] ss:$8 sps:$4 sm:$0xff]  }
  0x10   :  { %457 = vmatpush1.bf16.msra.mxu1 %v624_v15  ;;  %225 = vmatprep.subr.bf16.mxu0 %v625_v16  ;;  %v666_v43 = vld [vmem:[%s931_s3 + $0xa0] ss:$8 sps:$4 sm:$0xff]   ;;  %v669_v45 = vld [vmem:[%s931_s3 + $0xb4] ss:$8 sps:$4 sm:$0xff]   ;;  %v672_v49 = vld [vmem:[%s931_s3 + $0xb0] ss:$8 sps:$4 sm:$0xff]  }
  0x11   :  { %458 = vmatprep.subr.bf16.mxu1 %v627_v17  ;;  %v18_v46 = vld [vmem:[%s932_s0 + $0x8] sm:$0xff]  ;;  %v679_v56 = vld [vmem:[%s930_s2 + $0xd4] ss:$8 sps:$4 sm:$0xff]   ;;  %v683_v58 = vld [vmem:[%s930_s2 + $0xd0] ss:$8 sps:$4 sm:$0xff]  }
  0x12   :  { %v20_v47 = vld [vmem:[%s933_s1 + $0x8] sm:$0xff]  ;;  %v681_v57 = vld [vmem:[%s931_s3 + $0xd4] ss:$8 sps:$4 sm:$0xff]   ;;  %v684_v59 = vld [vmem:[%s931_s3 + $0xd0] ss:$8 sps:$4 sm:$0xff]  }
  0x13   :  { %226 = vmatpush1.bf16.msra.mxu0 %v629_v18  ;;  %v22_v50 = vsub.f32 %v18_v46, %v20_v47  ;;  %v673_v51 = vld [vmem:[%s930_s2 + $0xc4] ss:$8 sps:$4 sm:$0xff]   ;;  %v677_v54 = vld [vmem:[%s930_s2 + $0xc0] ss:$8 sps:$4 sm:$0xff]   ;;  %v691_v2 = vld [vmem:[%s930_s2 + $0xf4] ss:$8 sps:$4 sm:$0xff]  }
  0x14   :  { %459 = vmatpush1.bf16.msra.mxu1 %v630_v19  ;;  %227 = vmatprep.subr.bf16.mxu0 %v631_v20  ;;  %v675_v52 = vld [vmem:[%s931_s3 + $0xc4] ss:$8 sps:$4 sm:$0xff]   ;;  %v678_v55 = vld [vmem:[%s931_s3 + $0xc0] ss:$8 sps:$4 sm:$0xff]   ;;  %v693_v3 = vld [vmem:[%s931_s3 + $0xf4] ss:$8 sps:$4 sm:$0xff]  }
  0x15   :  { %460 = vmatprep.subr.bf16.mxu1 %v633_v21  ;;  %v24_v53 = vpack.c.bf16 %v22_v50, %v22_v50  ;;  %v685_v60 = vld [vmem:[%s930_s2 + $0xe4] ss:$8 sps:$4 sm:$0xff]   ;;  %v689_v62 = vld [vmem:[%s930_s2 + $0xe0] ss:$8 sps:$4 sm:$0xff]   ;;  %v695_v5 = vld [vmem:[%s930_s2 + $0xf0] ss:$8 sps:$4 sm:$0xff]  }
  0x16   :  { %v687_v61 = vld [vmem:[%s931_s3 + $0xe4] ss:$8 sps:$4 sm:$0xff]   ;;  %v690_v63 = vld [vmem:[%s931_s3 + $0xe0] ss:$8 sps:$4 sm:$0xff]   ;;  %v696_v6 = vld [vmem:[%s931_s3 + $0xf0] ss:$8 sps:$4 sm:$0xff]  }
  0x17   :  { %228 = vmatpush1.bf16.msra.mxu0 %v635_v22  ;;  %249 = vmatprep.mubr.bf16.mxu0 %v24_v53  ;;  %v17_v0 = vld [vmem:[%s932_s0] sm:$0xff] }
  0x18   :  { %461 = vmatpush1.bf16.msra.mxu1 %v636_v23  ;;  %229 = vmatprep.subr.bf16.mxu0 %v637_v24  ;;  %v19_v1 = vld [vmem:[%s933_s1] sm:$0xff] }
  0x19   :  { %462 = vmatprep.subr.bf16.mxu1 %v639_v25  ;;  %482 = vmatprep.mubr.bf16.mxu1 %v24_v53  ;;  %v21_v4 = vsub.f32 %v17_v0, %v19_v1 }
  0x1b   :  { %230 = vmatpush1.bf16.msra.mxu0 %v641_v26  ;;  %v23_v7 = vpack.c.bf16 %v21_v4, %v21_v4  ;;  %v697_v26 = vmov 1966171168  }
  0x1c   :  { %463 = vmatpush1.bf16.msra.mxu1 %v642_v27  ;;  %231 = vmatprep.subr.bf16.mxu0 %v643_v28  ;;  %v513_v27 = vunpack.c.l.s4 %v697_v26  ;;  %v515_v28 = vlaneseq }
  0x1d   :  { %464 = vmatprep.subr.bf16.mxu1 %v645_v29 }
  0x1e   :  { %vm529_vm0 = vcmp.lt.s32.totalorder %v515_v28, 256 }
  0x1f   :  { %232 = vmatpush1.bf16.msra.mxu0 %v647_v30 }
  0x20   :  { %465 = vmatpush1.bf16.msra.mxu1 %v648_v31  ;;  %233 = vmatprep.subr.bf16.mxu0 %v649_v32 }
  0x21   :  { %466 = vmatprep.subr.bf16.mxu1 %v651_v33  ;;  %v514_v33 = vunpack.c.0.s8 %v513_v27 }
  0x23   :  { %234 = vmatpush1.bf16.msra.mxu0 %v653_v34  ;;  %v516_v34 = vshrl.u32 %v515_v28, 7 }
  0x24   :  { %467 = vmatpush1.bf16.msra.mxu1 %v654_v35  ;;  %235 = vmatprep.subr.bf16.mxu0 %v655_v36 }
  0x25   :  { %468 = vmatprep.subr.bf16.mxu1 %v657_v37 }
  0x27   :  { %236 = vmatpush1.bf16.msra.mxu0 %v659_v38 }
  0x28   :  { %469 = vmatpush1.bf16.msra.mxu1 %v660_v39  ;;  %237 = vmatprep.subr.bf16.mxu0 %v661_v40  ;;  %v517_v39 = vsub.s32 %v514_v33, %v516_v34 }
  0x29   :  { %470 = vmatprep.subr.bf16.mxu1 %v663_v41 }
  0x2b   :  { %238 = vmatpush1.bf16.msra.mxu0 %v665_v42 }
  0x2c   :  { %471 = vmatpush1.bf16.msra.mxu1 %v666_v43  ;;  %239 = vmatprep.subr.bf16.mxu0 %v667_v44 }
  0x2d   :  { %472 = vmatprep.subr.bf16.mxu1 %v669_v45 }
  0x2f   :  { %240 = vmatpush1.bf16.msra.mxu0 %v671_v48 }
  0x30   :  { %473 = vmatpush1.bf16.msra.mxu1 %v672_v49  ;;  %241 = vmatprep.subr.bf16.mxu0 %v673_v51 }
  0x31   :  { %474 = vmatprep.subr.bf16.mxu1 %v675_v52 }
  0x33   :  { %242 = vmatpush1.bf16.msra.mxu0 %v677_v54 }
  0x34   :  { %475 = vmatpush1.bf16.msra.mxu1 %v678_v55  ;;  %243 = vmatprep.subr.bf16.mxu0 %v679_v56 }
  0x35   :  { %476 = vmatprep.subr.bf16.mxu1 %v681_v57 }
  0x37   :  { %244 = vmatpush1.bf16.msra.mxu0 %v683_v58 }
  0x38   :  { %477 = vmatpush1.bf16.msra.mxu1 %v684_v59  ;;  %245 = vmatprep.subr.bf16.mxu0 %v685_v60 }
  0x39   :  { %478 = vmatprep.subr.bf16.mxu1 %v687_v61 }
  0x3b   :  { %246 = vmatpush1.bf16.msra.mxu0 %v689_v62 }
  0x3c   :  { %479 = vmatpush1.bf16.msra.mxu1 %v690_v63  ;;  %247 = vmatprep.subr.bf16.mxu0 %v691_v2 }
  0x3d   :  { %480 = vmatprep.subr.bf16.mxu1 %v693_v3 }
  0x3f   :  { %248 = vmatpush1.bf16.msra.mxu0 %v695_v5 }
  0x40   :  { %481 = vmatpush1.bf16.msra.mxu1 %v696_v6 }
  0x42   :  { %250 = vmatmul.mubr.bf16.vlgmr.msra.gmra.mrb[0].mxu0 %v23_v7 }
  0x43   :  { %483 = vmatmul.mubr.bf16.vlgmr.msra.gmra.mrb[0].mxu1 %v23_v7 }
 0x115   :  { %v251_v8 = vpop.f32.mrb[0].mxu0 }
 0x116   :  { %v484_v9 = vpop.f32.mrb[0].mxu1  ;;  %v491_v10 = vand.u32 2147483647, %v251_v8  ;;  %v253_v12 = vpop.f32.mrb[1].mxu0 }
 0x117   :  { %v493_v11 = vand.u32 2147483647, %v484_v9  ;;  %v486_v13 = vpop.f32.mrb[1].mxu1  ;;  %v492_v14 = vand.u32 2147483647, %v253_v12  ;;  %v255_v16 = vpop.f32.mrb[2].mxu0 }
 0x118   :  { %v494_v15 = vand.u32 2147483647, %v486_v13  ;;  %v488_v17 = vpop.f32.mrb[2].mxu1  ;;  %v256_v19 = vpop.f32.mrb[3].mxu0 }
 0x119   :  { %v495_v18 = vadd.f32 %v493_v11, %v491_v10  ;;  %v489_v20 = vpop.f32.mrb[3].mxu1 }
 0x11a   :  { %v496_v21 = vadd.f32 %v494_v15, %v492_v14 }
 0x11b   :  { %v497_v22 = vrot.slane %v495_v18, 4 }
 0x11c   :  { %v503_v23 = vrot.slane %v496_v21, 4 }
 0x11d   :  { %v498_v24 = vadd.f32 %v497_v22, %v495_v18 }
 0x11e   :  { %v504_v25 = vadd.f32 %v503_v23, %v496_v21 }
 0x11f   :  { %v499_v29 = vrot.slane %v498_v24, 2 }
 0x120   :  { %v505_v30 = vrot.slane %v504_v25, 2 }
 0x121   :  { %v500_v31 = vadd.f32 %v499_v29, %v498_v24 }
 0x122   :  { %v506_v32 = vadd.f32 %v505_v30, %v504_v25 }
 0x123   :  { %v501_v35 = vrot.slane %v500_v31, 1 }
 0x124   :  { %v507_v36 = vrot.slane %v506_v32, 1 }
 0x125   :  { %v502_v37 = vadd.f32 %v501_v35, %v500_v31 }
 0x126   :  { %v508_v38 = vadd.f32 %v507_v36, %v506_v32 }
 0x128   :  { %v511_v40 = vcombine.low %v502_v37, %v508_v38 }
 0x12a   :  { %v518_v41 = vrot.slane %v511_v40, %v517_v39 }
 0x12c   :  { %v525_v42 = vrot.slane %v518_v41, %v517_v39 }
 0x12e   :  { %531 = vst.msk [vmem:[%s934_s4] sm:$0x3] %vm529_vm0, %v525_v42 }

</bundles_post_ra>
